<compile_context>
chip_gen: v7x
topology: tpu7x:2x2x1
jax: 0.10.0
libtpu: 0.0.40
codegen_flags: <defaults>
</compile_context>

<pallas_src>
import functools

import jax
import jax.numpy as jnp
from jax.experimental import pallas as pl
from jax.experimental.pallas import tpu as pltpu

_LANE = 128
_SUBLANE = 8


def _round_up(x, m):
    return ((x + m - 1) // m) * m


def _cdiv(a, b):
    return -(-a // b)


def _predictor_kernel(zt_ref, w_ref, b_ref, out_ref, *, d, h1p, h2p, h3p):
    # Transposed layout: features on sublanes, batch on lanes.
    #   zt_ref : (d, tile_b)           f32, one batch tile of z^T
    #   w_ref  : (h1p+h2p+h3p, cols)   packed [W1^T; W2^T; W3^T] (zero padded)
    #   b_ref  : (h1p+h2p+h3p, 1)      packed [b1; b2; b3]       (zero padded)
    #   out_ref: (h3p, tile_b)         y_hat^T (padded output rows -> 0.5, sliced off)
    x = jnp.maximum(zt_ref[...], 0.0)                                  # ReLU on input

    w1t = w_ref[0:h1p, 0:d]                                            # (h1p, d)
    w2t = w_ref[h1p:h1p + h2p, 0:h1p]                                  # (h2p, h1p)
    w3t = w_ref[h1p + h2p:h1p + h2p + h3p, 0:h2p]                      # (h3p, h2p)
    b1t = b_ref[0:h1p, :]                                              # (h1p, 1)
    b2t = b_ref[h1p:h1p + h2p, :]                                      # (h2p, 1)
    b3t = b_ref[h1p + h2p:h1p + h2p + h3p, :]                          # (h3p, 1)

    h1 = jnp.dot(w1t, x, preferred_element_type=jnp.float32)           # Linear 1
    h1 = jnp.maximum(h1 + b1t, 0.0)
    h2 = jnp.dot(w2t, h1, preferred_element_type=jnp.float32)          # Linear 2
    h2 = jnp.maximum(h2 + b2t, 0.0)
    h3 = jnp.dot(w3t, h2, preferred_element_type=jnp.float32) + b3t    # Linear 3

    # Exact sigmoid via EUP tanh: sigmoid(x) = 0.5 * tanh(0.5 x) + 0.5.
    out_ref[...] = 0.5 * jnp.tanh(0.5 * h3) + 0.5


def _choose_batch_tile(B):
    """Pick (tile_b, b_pad). tile_b is a multiple of 128 (lane-dense stores)
    unless a single tile covers the whole unpadded batch; >= 2 grid steps when
    the batch allows (v7x megacore), <= ~4096 rows per step."""
    if B <= 128:
        return B, B                      # single step, full-array blocks, no padding
    b_pad = _round_up(B, 2 * _LANE)      # even 128-aligned split -> >= 2 steps
    n_tiles = max(2, _cdiv(b_pad, 4096))
    tile_b = _round_up(_cdiv(b_pad, n_tiles), _LANE)
    b_pad = _round_up(B, tile_b)
    return tile_b, b_pad


def make_predictor(w1, b1, w2, b2, w3, b3):
    """Packs parameters once (transposed, sublane-padded) and returns a jitted
    forward(z_mean) -> y_hat implemented with a Pallas TPU kernel."""
    D, n1 = w1.shape                      # D -> D//2
    n2 = w2.shape[1]                      # D//2 -> D//8
    reg = w3.shape[1]                     # D//8 -> regression_dim

    h1p = _round_up(n1, _SUBLANE)
    h2p = _round_up(n2, _SUBLANE)
    h3p = _round_up(reg, _SUBLANE)
    rows = h1p + h2p + h3p
    cols = max(D, h1p, h2p)

    # --- pack once (hoisted out of the per-call jit path) -------------------
    w_slab = jnp.zeros((rows, cols), jnp.float32)
    w_slab = w_slab.at[0:n1, 0:D].set(w1.T.astype(jnp.float32))
    w_slab = w_slab.at[h1p:h1p + n2, 0:n1].set(w2.T.astype(jnp.float32))
    w_slab = w_slab.at[h1p + h2p:h1p + h2p + reg, 0:n2].set(w3.T.astype(jnp.float32))

    b_slab = jnp.zeros((rows, 1), jnp.float32)
    b_slab = b_slab.at[0:n1, 0].set(b1.reshape(-1).astype(jnp.float32))
    b_slab = b_slab.at[h1p:h1p + n2, 0].set(b2.reshape(-1).astype(jnp.float32))
    b_slab = b_slab.at[h1p + h2p:h1p + h2p + reg, 0].set(b3.reshape(-1).astype(jnp.float32))

    kernel = functools.partial(_predictor_kernel, d=D, h1p=h1p, h2p=h2p, h3p=h3p)

    @jax.jit
    def forward(z_mean):
        B = z_mean.shape[0]
        tile_b, b_pad = _choose_batch_tile(B)

        # Feed z^T (features on sublanes, batch on lanes). Only materialise a
        # padded buffer when the batch tile actually requires it.
        zt = z_mean.astype(jnp.float32).T                      # (D, B)
        if b_pad != B:
            zt = jnp.zeros((D, b_pad), jnp.float32).at[:, :B].set(zt)

        out = pl.pallas_call(
            kernel,
            out_shape=jax.ShapeDtypeStruct((h3p, b_pad), jnp.float32),
            grid=(b_pad // tile_b,),
            in_specs=[
                pl.BlockSpec((D, tile_b), lambda i: (0, i)),    # z^T batch tile
                pl.BlockSpec((rows, cols), lambda i: (0, 0)),   # packed weights (resident)
                pl.BlockSpec((rows, 1), lambda i: (0, 0)),      # packed biases  (resident)
            ],
            out_specs=pl.BlockSpec((h3p, tile_b), lambda i: (0, i)),
            compiler_params=pltpu.CompilerParams(
                dimension_semantics=("parallel",)),
        )(zt, w_slab, b_slab)

        return out[:reg, :B].T                                  # (B, regression_dim)

    return forward


def init_predictor_params(key, input_dim, regression_dim):
    """Deterministic PyTorch-style (uniform +/- 1/sqrt(fan_in)) init."""
    dims = [(input_dim, input_dim // 2),
            (input_dim // 2, input_dim // 8),
            (input_dim // 8, regression_dim)]
    params = []
    for (fan_in, fan_out) in dims:
        key, kw, kb = jax.random.split(key, 3)
        bound = 1.0 / (fan_in ** 0.5)
        # Stored as [in, out] so the reference computes x @ W.
        w = jax.random.uniform(kw, (fan_in, fan_out), jnp.float32,
                               minval=-bound, maxval=bound)
        b = jax.random.uniform(kb, (1, fan_out), jnp.float32,
                               minval=-bound, maxval=bound)
        params.extend([w, b])
    return params


if __name__ == "__main__":
    input_dim = 32        # latent dimension
    regression_dim = 2    # number of predicted properties
    batch = 8

    key = jax.random.PRNGKey(0)
    key, kz = jax.random.split(key)
    z_mean = jax.random.normal(kz, (batch, input_dim), dtype=jnp.float32)

    w1, b1, w2, b2, w3, b3 = init_predictor_params(key, input_dim,
                                                   regression_dim)

    forward = make_predictor(w1, b1, w2, b2, w3, b3)
    y_hat = forward(z_mean)
    jax.block_until_ready(y_hat)

    # Shape / range sanity.
    assert y_hat.shape == (batch, regression_dim)
    assert bool(jnp.all(jnp.isfinite(y_hat)))
    assert bool(jnp.all((y_hat > -1e-6) & (y_hat < 1.0 + 1e-6)))

    # Reference check against plain-JAX forward (f32).
    def ref(z):
        x = jnp.maximum(z, 0.0)
        h = jnp.maximum(x @ w1 + b1, 0.0)
        h = jnp.maximum(h @ w2 + b2, 0.0)
        return jax.nn.sigmoid(h @ w3 + b3)

    assert bool(jnp.allclose(y_hat, ref(z_mean), atol=1e-3, rtol=1e-3))

    print("KERNEL_OK")
</pallas_src>

<mosaic_0001>
module attributes {stable_mosaic.version = 11 : i64} {
  func.func @_predictor_kernel(%arg0: i32, %arg1: memref<32x8xf32, #tpu.memory_space<vmem>>, %arg2: memref<32x32xf32, #tpu.memory_space<vmem>>, %arg3: memref<32x1xf32, #tpu.memory_space<vmem>>, %arg4: memref<8x8xf32, #tpu.memory_space<vmem>>) attributes {dimension_semantics = [#tpu.dimension_semantics<parallel>], iteration_bounds = array<i64: 1>, scalar_prefetch = 0 : i64, scratch_operands = 0 : i64, tpu.core_type = #tpu.core_type<tc>, window_params = [{transform_indices = @transform_0, window_bounds = array<i64: 32, 8>}, {pipeline_mode = #tpu.pipeline_mode<synchronous>, transform_indices = @transform_1, window_bounds = array<i64: 32, 32>}, {pipeline_mode = #tpu.pipeline_mode<synchronous>, transform_indices = @transform_2, window_bounds = array<i64: 32, 1>}, {transform_indices = @transform_3, window_bounds = array<i64: 8, 8>}]} {
    %c0 = arith.constant 0 : index
    %c0_0 = arith.constant 0 : index
    %0 = vector.load %arg1[%c0, %c0_0] : memref<32x8xf32, #tpu.memory_space<vmem>>, vector<32x8xf32>
    %cst = arith.constant 0.000000e+00 : f32
    %1 = vector.broadcast %cst : f32 to vector<32x8xf32>
    %2 = arith.maximumf %0, %1 : vector<32x8xf32>
    %c0_1 = arith.constant 0 : index
    %c0_2 = arith.constant 0 : index
    %3 = vector.load %arg2[%c0_1, %c0_2] : memref<32x32xf32, #tpu.memory_space<vmem>>, vector<16x32xf32>
    %c16 = arith.constant 16 : index
    %c0_3 = arith.constant 0 : index
    %4 = vector.load %arg2[%c16, %c0_3] : memref<32x32xf32, #tpu.memory_space<vmem>>, vector<8x16xf32>
    %c24 = arith.constant 24 : index
    %c0_4 = arith.constant 0 : index
    %5 = vector.load %arg2[%c24, %c0_4] : memref<32x32xf32, #tpu.memory_space<vmem>>, vector<8x8xf32>
    %c0_5 = arith.constant 0 : index
    %c0_6 = arith.constant 0 : index
    %6 = vector.load %arg3[%c0_5, %c0_6] : memref<32x1xf32, #tpu.memory_space<vmem>>, vector<16x1xf32>
    %c16_7 = arith.constant 16 : index
    %c0_8 = arith.constant 0 : index
    %7 = vector.load %arg3[%c16_7, %c0_8] : memref<32x1xf32, #tpu.memory_space<vmem>>, vector<8x1xf32>
    %c24_9 = arith.constant 24 : index
    %c0_10 = arith.constant 0 : index
    %8 = vector.load %arg3[%c24_9, %c0_10] : memref<32x1xf32, #tpu.memory_space<vmem>>, vector<8x1xf32>
    %cst_11 = arith.constant dense<0.000000e+00> : vector<16x8xf32>
    %9 = tpu.matmul %3, %2, %cst_11 {dimension_numbers = #tpu.dot_dimension_numbers<[1], [0], [0], [1], [0, 0, 1, 1], [], []>} : vector<16x32xf32>, vector<32x8xf32>, vector<16x8xf32> -> vector<16x8xf32>
    %10 = vector.broadcast %6 : vector<16x1xf32> to vector<16x8xf32>
    %11 = arith.addf %9, %10 : vector<16x8xf32>
    %cst_12 = arith.constant 0.000000e+00 : f32
    %12 = vector.broadcast %cst_12 : f32 to vector<16x8xf32>
    %13 = arith.maximumf %11, %12 : vector<16x8xf32>
    %cst_13 = arith.constant dense<0.000000e+00> : vector<8x8xf32>
    %14 = tpu.matmul %4, %13, %cst_13 {dimension_numbers = #tpu.dot_dimension_numbers<[1], [0], [0], [1], [0, 0, 1, 1], [], []>} : vector<8x16xf32>, vector<16x8xf32>, vector<8x8xf32> -> vector<8x8xf32>
    %15 = vector.broadcast %7 : vector<8x1xf32> to vector<8x8xf32>
    %16 = arith.addf %14, %15 : vector<8x8xf32>
    %cst_14 = arith.constant 0.000000e+00 : f32
    %17 = vector.broadcast %cst_14 : f32 to vector<8x8xf32>
    %18 = arith.maximumf %16, %17 : vector<8x8xf32>
    %cst_15 = arith.constant dense<0.000000e+00> : vector<8x8xf32>
    %19 = tpu.matmul %5, %18, %cst_15 {dimension_numbers = #tpu.dot_dimension_numbers<[1], [0], [0], [1], [0, 0, 1, 1], [], []>} : vector<8x8xf32>, vector<8x8xf32>, vector<8x8xf32> -> vector<8x8xf32>
    %20 = vector.broadcast %8 : vector<8x1xf32> to vector<8x8xf32>
    %21 = arith.addf %19, %20 : vector<8x8xf32>
    %cst_16 = arith.constant 5.000000e-01 : f32
    %22 = vector.broadcast %cst_16 : f32 to vector<8x8xf32>
    %23 = arith.mulf %22, %21 : vector<8x8xf32>
    %24 = math.tanh %23 : vector<8x8xf32>
    %cst_17 = arith.constant 5.000000e-01 : f32
    %25 = vector.broadcast %cst_17 : f32 to vector<8x8xf32>
    %26 = arith.mulf %25, %24 : vector<8x8xf32>
    %cst_18 = arith.constant 5.000000e-01 : f32
    %27 = vector.broadcast %cst_18 : f32 to vector<8x8xf32>
    %28 = arith.addf %26, %27 : vector<8x8xf32>
    %c0_19 = arith.constant 0 : index
    %c0_20 = arith.constant 0 : index
    %29 = vector.load %arg4[%c0_19, %c0_20] : memref<8x8xf32, #tpu.memory_space<vmem>>, vector<8x8xf32>
    tpu.vector_store %arg4[%c0_19, %c0_20], %28 {strides = array<i32>} : memref<8x8xf32, #tpu.memory_space<vmem>>, vector<8x8xf32>,
    return
  }
  func.func @transform_0(%arg0: i32) -> (i32, i32) {
    %c0_i32 = arith.constant 0 : i32
    %c0_i32_0 = arith.constant 0 : i32
    return %c0_i32, %arg0 : i32, i32
  }
  func.func @transform_1(%arg0: i32) -> (i32, i32) {
    %c0_i32 = arith.constant 0 : i32
    %c0_i32_0 = arith.constant 0 : i32
    %c0_i32_1 = arith.constant 0 : i32
    return %c0_i32, %c0_i32_0 : i32, i32
  }
  func.func @transform_2(%arg0: i32) -> (i32, i32) {
    %c0_i32 = arith.constant 0 : i32
    %c0_i32_0 = arith.constant 0 : i32
    %c0_i32_1 = arith.constant 0 : i32
    return %c0_i32, %c0_i32_0 : i32, i32
  }
  func.func @transform_3(%arg0: i32) -> (i32, i32) {
    %c0_i32 = arith.constant 0 : i32
    %c0_i32_0 = arith.constant 0 : i32
    return %c0_i32, %arg0 : i32, i32
  }
}

</mosaic_0001>

<bundles_post_ra>
// kernel: forward.1
= control target key start
LH: loop header
LB: loop body
LE: loop exit
PB: predicated region body
PF: predicated region fallthrough
CT: control target
= control target key end

     0   :  { %8 = vsyncpa [#allocation3], 0  ;;  %s391_s12 = smov [#allocation2]   ;;  %s461_s0 = inlined_call_operand.vmem [shape: f32[32,8], index: 0, kind: input, shape index: {}]   ;;  %s462_s1 = inlined_call_operand.hbm [shape: f32[32,32], index: 1, kind: input, shape index: {}]   ;;  %s463_s2 = inlined_call_operand.vmem [shape: f32[32,1], index: 2, kind: input, shape index: {}]   ;;  %s464_s3 = inlined_call_operand.vmem [shape: f32[8,8], index: 3, kind: output, shape index: {}]  }
   0x1   :  { %s16_s13 = sshll.u32 %s391_s12, 4  ;;  %s367_s16 = scalar_lea.hbm %s462_s1, 512  ;;  %s17_s13 = int_to_ptr.vmem [resolvable:$true] %s16_s13 }
   0x2   :  { %p368_p0 = scmp.ne.s32.totalorder %s462_s1, %s367_s16  ;;  %p371_p1 = scmp.lt.u32.totalorder %s367_s16, %s462_s1 }
   0x4   :  { %p373_p2 = pnand %p371_p1, %p368_p0 }
   0x6   :  { %376 = shalt.err (!%p373_p2)
}
   0x7   :  { %s377_s21 = scalar_lea.vmem %s17_s13, 512  ;;  %p382_p4 = scmp.lt.s32.totalorder %s17_s13, %s17_s13 }
   0x8   :  { %p378_p3 = scmp.ne.s32.totalorder %s17_s13, %s377_s21  ;;  %p383_p5 = scmp.lt.s32.totalorder %s377_s21, %s377_s21 }
   0xa   :  { %p384_p6 = por %p383_p5, %p382_p4 }
   0xc   :  { %p385_p7 = pnand %p384_p6, %p378_p3 }
   0xe   :  { %388 = shalt.err (!%p385_p7)
}
   0xf   :  { %s392_s22 = smov 128   ;;  %s393_s23 = smov 8  }
  0x10   :  { %22 = dma.hbm_to_vmem [thread:$0]  %s462_s1, 512, %s17_s13, [#allocation3], %s392_s22, %s392_s22, %s393_s23  }
  0x11   :  { %389 = dma.done.wait [#allocation3], 512  }
  0x12   :  { %390 = vsyncadd [#allocation3], 4294966784  ;;  %v394_v0 = vmov 0   ;;  %vm54_vm0 = vcmask 261120   ;;  %v28_v1 = vld [vmem:[%s461_s0] sm:$0xff]  ;;  %v29_v2 = vld [vmem:[%s461_s0 + $0x8] sm:$0xff] }
  0x13   :  { %363 = vset.pattern.permute.xlu0 %v394_v0  ;;  %364 = vset.pattern.permute.xlu1 %v394_v0  ;;  %v30_v3 = vld [vmem:[%s461_s0 + $0x10] sm:$0xff]  ;;  %v32_v4 = vmax.f32 %v28_v1, 0.0  ;;  %v33_v5 = vmax.f32 %v29_v2, 0.0  ;;  %v31_v6 = vld [vmem:[%s461_s0 + $0x18] sm:$0xff]  ;;  %v36_v8 = vld [vmem:[#allocation2] sm:$0xff]  ;;  %v395_v15 = vmov 0.0|0.0  }
  0x14   :  { %v34_v7 = vmax.f32 %v30_v3, 0.0  ;;  %v35_v9 = vmax.f32 %v31_v6, 0.0  ;;  %330 = vmatprep.mubr.msk.f32.mxu0 %vm54_vm0, %v36_v8  ;;  %v40_v10 = vld [vmem:[%s463_s2] sm:$0xff]  ;;  %v41_v13 = vld [vmem:[%s463_s2 + $0x8] sm:$0xff]  ;;  %353 = vmatprep.subr.bf16.mxu1 %v395_v15  ;;  %vm396_vm1 = vmmov 0   ;;  %v397_v16 = vmov 0.0  }
  0x15   :  { %v345_v11 = vpack.c.bf16 %v33_v5, %v32_v4  ;;  %46 = vperm.xlu0 %363, %v40_v10   ;;  %v37_v14 = vld [vmem:[#allocation2 + $0x8] sm:$0xff]  ;;  %337 = vmatprep.mubr.msk.f32.mxu1 %vm396_vm1, %v397_v16  ;;  %v42_v17 = vld [vmem:[%s463_s2 + $0x10] sm:$0xff]  ;;  %v43_v18 = vld [vmem:[%s463_s2 + $0x18] sm:$0xff]  ;;  %vm143_vm2 = vcmask 130048   ;;  %vm223_vm3 = vcmask 64512  }
  0x16   :  { %v349_v12 = vpack.c.bf16 %v35_v9, %v34_v7  ;;  %140 = vperm.xlu1 %364, %v42_v17   ;;  %v38_v28 = vld [vmem:[#allocation2 + $0x10] sm:$0xff]  ;;  %v39_v34 = vld [vmem:[#allocation2 + $0x18] sm:$0xff] }
  0x17   :  { %346 = vmatprep.subr.bf16.mxu0 %v345_v11 }
  0x18   :  { %348 = vmatpush3.bf16.msra.mxu0 %v345_v11 }
  0x19   :  { %350 = vmatprep.subr.bf16.mxu0 %v349_v12  ;;  %51 = vperm.xlu0 %363, %v41_v13  }
  0x1a   :  { %220 = vperm.xlu1 %364, %v43_v18  }
  0x1c   :  { %352 = vmatpush3.bf16.msra.mxu0 %v349_v12 }
  0x1f   :  { %331 = vmatmul.mubr.msk.f32.vlgmr.msra.gmra.mrb[0].mxu0 %vm54_vm0, %v37_v14 }
  0x94   :  { %v47_v19 = vpop.permute.xlu0 %46 }
  0x95   :  { %v141_v29 = vpop.permute.xlu1 %140 }
  0x98   :  { %v52_v20 = vpop.permute.xlu0 %51 }
  0x99   :  { %v221_v35 = vpop.permute.xlu1 %220 }
  0xf2   :  { %v332_v21 = vpop.f32.mrb[0].mxu0 }
  0xf3   :  { %v133_v22 = vadd.f32 %v332_v21, %v52_v20  ;;  %v127_v23 = vpop.f32.mrb[1].mxu0 }
  0xf4   :  { %v128_v24 = vadd.f32 %v127_v23, %v47_v19 }
  0xf5   :  { %v137_v25 = vmax.f32 %v133_v22, 0.0 }
  0xf6   :  { %v136_v26 = vmax.f32 %v128_v24, 0.0 }
  0xf8   :  { %v354_v27 = vpack.c.bf16 %v137_v25, %v136_v26 }
  0xfa   :  { %355 = vmatpush3.bf16.msra.mxu1 %v354_v27 }
  0xfb   :  { %340 = vmatprep.subr.mxu1 %v397_v16 }
  0xfd   :  { %338 = vmatmul.mubr.msk.f32.vlgmr.msra.gmra.mrb[0].mxu1 %vm143_vm2, %v38_v28 }
  0xfe   :  { %342 = vmatprep.mubr.msk.f32.mxu1 %vm396_vm1, %v397_v16 }
 0x1d0   :  { %v213_v30 = vpop.f32.mrb[0].mxu1 }
 0x1d1   :  { %v214_v31 = vadd.f32 %v213_v30, %v141_v29  ;;  %v339_v32 = vpop.f32.mrb[1].mxu1 }
 0x1d3   :  { %v217_v33 = vmax.f32 %v214_v31, 0.0 }
 0x1d5   :  { %341 = vmatpush3.msra.mxu1 %v217_v33 }
 0x1d6   :  { %343 = vmatmul.mubr.msk.f32.vlgmr.msra.gmra.mrb[2].mxu1 %vm223_vm3, %v39_v34 }
 0x2a9   :  { %v293_v36 = vpop.f32.mrb[2].mxu1 }
 0x2aa   :  { %v294_v37 = vadd.f32 %v293_v36, %v221_v35  ;;  %v344_v38 = vpop.f32.mrb[3].mxu1 }
 0x2ac   :  { %v297_v39 = vmul.f32 0.5, %v294_v37 }
 0x2ae   :  { %365 = vtanh.f32 %v297_v39 }
 0x2b8   :  { %v366_v40 = vpop.eup %365 }
 0x2b9   :  { %v299_v41 = vmul.f32 0.5, %v366_v40 }
 0x2bb   :  { %v300_v42 = vadd.f32 0.5, %v299_v41 }
 0x2bd   :  { %301 = vst.msk [vmem:[%s464_s3] sm:$0xff] %vm223_vm3, %v300_v42 }
 0x2be   :  { %306 = vsyncpa [#allocation3], 1 }

</bundles_post_ra>
